<compile_context>
chip_gen: v7x
topology: tpu7x:2x2x1
jax: 0.10.0
libtpu: 0.0.40
codegen_flags: <defaults>
</compile_context>

<pallas_src>
import functools

import jax
import jax.numpy as jnp
from jax.experimental import pallas as pl
from jax.experimental.pallas import tpu as pltpu  # noqa: F401  (TPU backend)


LANE = 128       # lane width: pad feature dims to multiples of this
SUBLANE = 8      # f32 sublane height: pad batch to multiples of this


def _round_up(n, m):
    return ((n + m - 1) // m) * m


# ---------------------------------------------------------------------------
# Single fused-MLP kernel: statically unrolled chain of matmul + bias (+ ReLU)
# ---------------------------------------------------------------------------
def _fused_mlp_kernel(x_ref, w_ref, b_ref, o_ref, *, num_layers):
    # x: [Bp, P]   w: [L, P, P]   b: [L, Bp, P]   o: [Bp, P]
    h = x_ref[...]
    for l in range(num_layers):                      # static unroll
        h = jnp.dot(h, w_ref[l], preferred_element_type=jnp.float32)
        h = h + b_ref[l]                             # full-vreg add (pre-bcast)
        if l < num_layers - 1:                       # hidden layers only
            h = jnp.maximum(h, 0.0)                  # ReLU (BN already folded)
    o_ref[...] = h.astype(o_ref.dtype)


def fused_mlp(x_pad, w_stack, b_stack):
    """x_pad: [Bp, P], w_stack: [L, P, P], b_stack: [L, Bp, P] -> [Bp, P]."""
    Bp, P = x_pad.shape
    L = w_stack.shape[0]
    kernel = functools.partial(_fused_mlp_kernel, num_layers=L)

    full = lambda a: pl.BlockSpec(a.shape, lambda: (0,) * a.ndim)
    return pl.pallas_call(
        kernel,
        out_shape=jax.ShapeDtypeStruct((Bp, P), jnp.float32),
        grid=(),                                     # tiny problem: one step
        in_specs=[full(x_pad), full(w_stack), full(b_stack)],
        out_specs=pl.BlockSpec((Bp, P), lambda: (0, 0)),
    )(x_pad, w_stack, b_stack)


# ---------------------------------------------------------------------------
# Parameter construction (mimics PyTorch defaults) and one-time fold/pad prep
# ---------------------------------------------------------------------------
def init_dnn_params(key, input_dim, output_dim, layer_sizes):
    dims = [input_dim] + list(layer_sizes) + [output_dim]
    params = []
    for i in range(len(dims) - 1):
        din, dout = dims[i], dims[i + 1]
        key, kw, kb, km = jax.random.split(key, 4)
        bound = 1.0 / jnp.sqrt(jnp.float32(din))
        w = jax.random.uniform(kw, (din, dout), jnp.float32, -bound, bound)
        b = jax.random.uniform(kb, (1, dout), jnp.float32, -bound, bound)
        is_hidden = i < len(layer_sizes)
        if is_hidden:
            # BatchNorm1d running stats / affine params (perturbed so the BN
            # path is actually exercised by the correctness check).
            gamma = jnp.ones((1, dout), jnp.float32) * 1.1
            beta = jnp.full((1, dout), 0.05, jnp.float32)
            mean = 0.01 * jax.random.normal(km, (1, dout), jnp.float32)
            var = jnp.ones((1, dout), jnp.float32) * 0.9
        else:
            gamma = jnp.ones((1, dout), jnp.float32)
            beta = jnp.zeros((1, dout), jnp.float32)
            mean = jnp.zeros((1, dout), jnp.float32)
            var = jnp.ones((1, dout), jnp.float32)
        params.append(dict(w=w, b=b, gamma=gamma, beta=beta,
                           mean=mean, var=var, is_hidden=is_hidden))
    return params


def prepare_fused_params(params, batch, eps=1e-5):
    """One-time prep: fold eval-mode BN into (W, b), zero-pad, pre-broadcast
    biases to the padded batch rows, and stack.

    Call ONCE per parameter set / batch shape and cache the result; the hot
    path (`dnn_forward_fused`) only pads the input, runs the kernel and
    slices the output.

    Note: all feature dims here are <= 128 so a single global padded width P
    is exact; for strongly non-uniform large layer widths pad per-layer
    instead to avoid quadratic VMEM inflation.
    """
    feat_dims = [params[0]["w"].shape[0]] + [p["w"].shape[1] for p in params]
    P = max(_round_up(d, LANE) for d in feat_dims)
    Bp = _round_up(batch, SUBLANE)

    ws, bs = [], []
    for layer in params:
        w, b = layer["w"], layer["b"]                      # [din,dout], [1,dout]
        if layer["is_hidden"]:
            s = layer["gamma"] / jnp.sqrt(layer["var"] + eps)   # [1, dout]
            w = w * s
            b = (b - layer["mean"]) * s + layer["beta"]
        din, dout = w.shape
        w_pad = jnp.zeros((P, P), jnp.float32).at[:din, :dout].set(w)
        b_pad = jnp.zeros((1, P), jnp.float32).at[:, :dout].set(b)
        ws.append(w_pad)
        bs.append(jnp.broadcast_to(b_pad, (Bp, P)))        # pre-broadcast rows
    w_stack = jnp.stack(ws)                                 # [L, P, P]
    b_stack = jnp.stack(bs)                                 # [L, Bp, P]
    # Materialize on device now so per-call latency excludes all prep work.
    return jax.device_put(w_stack), jax.device_put(b_stack), P, Bp


@functools.partial(jax.jit, static_argnames=("out_dim",))
def dnn_forward_fused(w_stack, b_stack, x, *, out_dim):
    """Hot path (jitted): pad input -> one fused Pallas kernel -> slice.

    Eval-mode forward: Linear -> BN(running stats, folded) -> ReLU per hidden
    layer; final plain Linear.  Dropout is identity in eval mode.
    """
    # TODO(synk): training-mode Dropout / BatchNorm batch-statistics are not
    # implemented; eval-mode semantics only.
    B, din = x.shape
    Bp, P = b_stack.shape[1], b_stack.shape[2]
    x_pad = jnp.zeros((Bp, P), jnp.float32).at[:B, :din].set(x)
    out_pad = fused_mlp(x_pad, w_stack, b_stack)
    return out_pad[:B, :out_dim]


# ---------------------------------------------------------------------------
# Pure-JAX reference (un-fused, un-folded) for correctness check
# ---------------------------------------------------------------------------
def dnn_forward_ref(params, x, eps=1e-5):
    h = x
    for layer in params:
        h = h @ layer["w"] + layer["b"]
        if layer["is_hidden"]:
            h = (h - layer["mean"]) / jnp.sqrt(layer["var"] + eps)
            h = h * layer["gamma"] + layer["beta"]
            h = jnp.maximum(h, 0.0)
    return h


if __name__ == "__main__":
    key = jax.random.PRNGKey(0)
    kx, kp = jax.random.split(key)

    batch = 8
    input_dim = 32
    layer_sizes = [64, 48, 32]
    output_dim = 16

    x = jax.random.normal(kx, (batch, input_dim), jnp.float32)
    params = init_dnn_params(kp, input_dim, output_dim, layer_sizes)

    # --- one-time prep (BN fold + pad + stack), cached across calls ---------
    w_stack, b_stack, P, Bp = prepare_fused_params(params, batch)

    # --- hot path: jitted pad -> fused kernel -> slice ----------------------
    out = dnn_forward_fused(w_stack, b_stack, x, out_dim=output_dim)
    out = jax.block_until_ready(out)
    # Second call reuses the compiled executable and cached weight stacks.
    out2 = jax.block_until_ready(
        dnn_forward_fused(w_stack, b_stack, x, out_dim=output_dim))

    ref = dnn_forward_ref(params, x)
    assert out.shape == (batch, output_dim)
    assert jnp.allclose(out, ref, atol=1e-4, rtol=1e-4), "mismatch vs reference"
    assert jnp.allclose(out2, out), "non-deterministic across cached calls"

    print("KERNEL_OK")
</pallas_src>

<mosaic_0001>
module attributes {stable_mosaic.version = 11 : i64} {
  func.func @_fused_mlp_kernel(%arg0: memref<8x128xf32, #tpu.memory_space<vmem>>, %arg1: memref<4x128x128xf32, #tpu.memory_space<vmem>>, %arg2: memref<4x8x128xf32, #tpu.memory_space<vmem>>, %arg3: memref<8x128xf32, #tpu.memory_space<vmem>>) attributes {dimension_semantics = [], scalar_prefetch = 0 : i64, scratch_operands = 0 : i64, tpu.core_type = #tpu.core_type<tc>} {
    %c0 = arith.constant 0 : index
    %c0_0 = arith.constant 0 : index
    %0 = vector.load %arg0[%c0, %c0_0] : memref<8x128xf32, #tpu.memory_space<vmem>>, vector<8x128xf32>
    %c0_1 = arith.constant 0 : index
    %c0_2 = arith.constant 0 : index
    %c0_3 = arith.constant 0 : index
    %1 = vector.load %arg1[%c0_1, %c0_2, %c0_3] : memref<4x128x128xf32, #tpu.memory_space<vmem>>, vector<1x128x128xf32>
    %2 = vector.shape_cast %1 : vector<1x128x128xf32> to vector<128x128xf32>
    %cst = arith.constant dense<0.000000e+00> : vector<8x128xf32>
    %3 = tpu.matmul %0, %2, %cst {dimension_numbers = #tpu.dot_dimension_numbers<[1], [0], [0], [1], [0, 0, 1, 1], [], []>} : vector<8x128xf32>, vector<128x128xf32>, vector<8x128xf32> -> vector<8x128xf32>
    %c0_4 = arith.constant 0 : index
    %c0_5 = arith.constant 0 : index
    %c0_6 = arith.constant 0 : index
    %4 = vector.load %arg2[%c0_4, %c0_5, %c0_6] : memref<4x8x128xf32, #tpu.memory_space<vmem>>, vector<1x8x128xf32>
    %5 = vector.shape_cast %4 : vector<1x8x128xf32> to vector<8x128xf32>
    %6 = arith.addf %3, %5 : vector<8x128xf32>
    %cst_7 = arith.constant 0.000000e+00 : f32
    %7 = vector.broadcast %cst_7 : f32 to vector<8x128xf32>
    %8 = arith.maximumf %6, %7 : vector<8x128xf32>
    %c1 = arith.constant 1 : index
    %c0_8 = arith.constant 0 : index
    %c0_9 = arith.constant 0 : index
    %9 = vector.load %arg1[%c1, %c0_8, %c0_9] : memref<4x128x128xf32, #tpu.memory_space<vmem>>, vector<1x128x128xf32>
    %10 = vector.shape_cast %9 : vector<1x128x128xf32> to vector<128x128xf32>
    %cst_10 = arith.constant dense<0.000000e+00> : vector<8x128xf32>
    %11 = tpu.matmul %8, %10, %cst_10 {dimension_numbers = #tpu.dot_dimension_numbers<[1], [0], [0], [1], [0, 0, 1, 1], [], []>} : vector<8x128xf32>, vector<128x128xf32>, vector<8x128xf32> -> vector<8x128xf32>
    %c1_11 = arith.constant 1 : index
    %c0_12 = arith.constant 0 : index
    %c0_13 = arith.constant 0 : index
    %12 = vector.load %arg2[%c1_11, %c0_12, %c0_13] : memref<4x8x128xf32, #tpu.memory_space<vmem>>, vector<1x8x128xf32>
    %13 = vector.shape_cast %12 : vector<1x8x128xf32> to vector<8x128xf32>
    %14 = arith.addf %11, %13 : vector<8x128xf32>
    %cst_14 = arith.constant 0.000000e+00 : f32
    %15 = vector.broadcast %cst_14 : f32 to vector<8x128xf32>
    %16 = arith.maximumf %14, %15 : vector<8x128xf32>
    %c2 = arith.constant 2 : index
    %c0_15 = arith.constant 0 : index
    %c0_16 = arith.constant 0 : index
    %17 = vector.load %arg1[%c2, %c0_15, %c0_16] : memref<4x128x128xf32, #tpu.memory_space<vmem>>, vector<1x128x128xf32>
    %18 = vector.shape_cast %17 : vector<1x128x128xf32> to vector<128x128xf32>
    %cst_17 = arith.constant dense<0.000000e+00> : vector<8x128xf32>
    %19 = tpu.matmul %16, %18, %cst_17 {dimension_numbers = #tpu.dot_dimension_numbers<[1], [0], [0], [1], [0, 0, 1, 1], [], []>} : vector<8x128xf32>, vector<128x128xf32>, vector<8x128xf32> -> vector<8x128xf32>
    %c2_18 = arith.constant 2 : index
    %c0_19 = arith.constant 0 : index
    %c0_20 = arith.constant 0 : index
    %20 = vector.load %arg2[%c2_18, %c0_19, %c0_20] : memref<4x8x128xf32, #tpu.memory_space<vmem>>, vector<1x8x128xf32>
    %21 = vector.shape_cast %20 : vector<1x8x128xf32> to vector<8x128xf32>
    %22 = arith.addf %19, %21 : vector<8x128xf32>
    %cst_21 = arith.constant 0.000000e+00 : f32
    %23 = vector.broadcast %cst_21 : f32 to vector<8x128xf32>
    %24 = arith.maximumf %22, %23 : vector<8x128xf32>
    %c3 = arith.constant 3 : index
    %c0_22 = arith.constant 0 : index
    %c0_23 = arith.constant 0 : index
    %25 = vector.load %arg1[%c3, %c0_22, %c0_23] : memref<4x128x128xf32, #tpu.memory_space<vmem>>, vector<1x128x128xf32>
    %26 = vector.shape_cast %25 : vector<1x128x128xf32> to vector<128x128xf32>
    %cst_24 = arith.constant dense<0.000000e+00> : vector<8x128xf32>
    %27 = tpu.matmul %24, %26, %cst_24 {dimension_numbers = #tpu.dot_dimension_numbers<[1], [0], [0], [1], [0, 0, 1, 1], [], []>} : vector<8x128xf32>, vector<128x128xf32>, vector<8x128xf32> -> vector<8x128xf32>
    %c3_25 = arith.constant 3 : index
    %c0_26 = arith.constant 0 : index
    %c0_27 = arith.constant 0 : index
    %28 = vector.load %arg2[%c3_25, %c0_26, %c0_27] : memref<4x8x128xf32, #tpu.memory_space<vmem>>, vector<1x8x128xf32>
    %29 = vector.shape_cast %28 : vector<1x8x128xf32> to vector<8x128xf32>
    %30 = arith.addf %27, %29 : vector<8x128xf32>
    %c0_28 = arith.constant 0 : index
    %c0_29 = arith.constant 0 : index
    %31 = vector.load %arg3[%c0_28, %c0_29] : memref<8x128xf32, #tpu.memory_space<vmem>>, vector<8x128xf32>
    tpu.vector_store %arg3[%c0_28, %c0_29], %30 {strides = array<i32>} : memref<8x128xf32, #tpu.memory_space<vmem>>, vector<8x128xf32>,
    return
  }
}

</mosaic_0001>

<bundles_post_ra>
// kernel: dnn_forward_fused.1
= control target key start
LH: loop header
LB: loop body
LE: loop exit
PB: predicated region body
PF: predicated region fallthrough
CT: control target
= control target key end

     0   :  { %8 = vsyncpa [#allocation3], 0  ;;  %s871_s0 = inlined_call_operand.vmem [shape: f32[8,128], index: 0, kind: input, shape index: {}]   ;;  %s872_s1 = inlined_call_operand.hbm [shape: f32[4,128,128], index: 1, kind: input, shape index: {}]   ;;  %s873_s2 = inlined_call_operand.vmem [shape: f32[4,8,128], index: 2, kind: input, shape index: {}]   ;;  %s874_s3 = inlined_call_operand.hbm [shape: f32[8,128], index: 3, kind: output, shape index: {}]  }
   0x1   :  { %9 = vsyncpa [#allocation4], 0  ;;  %s765_s12 = smov [#allocation2]   ;;  %s717_s16 = scalar_lea.hbm %s872_s1, 8192 }
   0x2   :  { %s17_s13 = sshll.u32 %s765_s12, 4  ;;  %p718_p0 = scmp.ne.s32.totalorder %s872_s1, %s717_s16  ;;  %s18_s13 = int_to_ptr.vmem [resolvable:$true] %s17_s13 }
   0x3   :  { %p721_p1 = scmp.lt.u32.totalorder %s717_s16, %s872_s1 }
   0x5   :  { %p723_p2 = pnand %p721_p1, %p718_p0 }
   0x7   :  { %726 = shalt.err (!%p723_p2)
}
   0x8   :  { %s727_s21 = scalar_lea.vmem %s18_s13, 8192  ;;  %p732_p4 = scmp.lt.s32.totalorder %s18_s13, %s18_s13 }
   0x9   :  { %p728_p3 = scmp.ne.s32.totalorder %s18_s13, %s727_s21  ;;  %p733_p5 = scmp.lt.s32.totalorder %s727_s21, %s727_s21 }
   0xb   :  { %p734_p6 = por %p733_p5, %p732_p4 }
   0xd   :  { %p735_p7 = pnand %p734_p6, %p728_p3 }
   0xf   :  { %738 = shalt.err (!%p735_p7)
}
  0x10   :  { %s766_s22 = smov 128   ;;  %s767_s23 = smov 8  }
  0x11   :  { %23 = dma.hbm_to_vmem [thread:$0]  %s872_s1, 8192, %s18_s13, [#allocation3], %s766_s22, %s766_s22, %s767_s23  }
  0x12   :  { %761 = dma.done.wait [#allocation3], 8192  }
  0x13   :  { %762 = vsyncadd [#allocation3], 4294959104  ;;  %v768_v0 = vmov 0.0|0.0   ;;  %vm769_vm0 = vmmov 0   ;;  %v770_v1 = vmov 0.0   ;;  %v30_v2 = vld [vmem:[#allocation2] sm:$0xff] }
  0x14   :  { %614 = vmatprep.subr.bf16.mxu0 %v768_v0  ;;  %506 = vmatprep.mubr.msk.f32.mxu0 %vm769_vm0, %v770_v1  ;;  %v31_v3 = vld [vmem:[#allocation2 + $0x8] sm:$0xff]  ;;  %v32_v4 = vld [vmem:[#allocation2 + $0x10] sm:$0xff]  ;;  %v33_v6 = vld [vmem:[#allocation2 + $0x18] sm:$0xff]  ;;  %s771_s7 = smov [#allocation5]  }
  0x15   :  { %638 = vmatprep.subr.bf16.mxu1 %v768_v0  ;;  %541 = vmatprep.mubr.msk.f32.mxu1 %vm769_vm0, %v770_v1  ;;  %v615_v5 = vpack.c.bf16 %v31_v3, %v30_v2  ;;  %v618_v7 = vpack.c.bf16 %v33_v6, %v32_v4  ;;  %v34_v8 = vld [vmem:[#allocation2 + $0x20] sm:$0xff]  ;;  %v35_v9 = vld [vmem:[#allocation2 + $0x28] sm:$0xff]  ;;  %v121_v12 = vld [vmem:[#allocation2 + $0x90] sm:$0xff]  ;;  %s394_s8 = sshll.u32 %s771_s7, 4  ;;  %s395_s8 = int_to_ptr.vmem [resolvable:$true] %s394_s8 }
  0x16   :  { %v119_v10 = vld [vmem:[#allocation2 + $0x80] sm:$0xff]  ;;  %v120_v11 = vld [vmem:[#allocation2 + $0x88] sm:$0xff]  ;;  %v122_v13 = vld [vmem:[#allocation2 + $0x98] sm:$0xff]  ;;  %v621_v14 = vpack.c.bf16 %v35_v9, %v34_v8  ;;  %s739_s9 = scalar_lea.vmem %s395_s8, 128  ;;  %p744_p9 = scmp.lt.s32.totalorder %s395_s8, %s395_s8 }
  0x17   :  { %616 = vmatpush3.bf16.msra.mxu0 %v615_v5  ;;  %v639_v15 = vpack.c.bf16 %v120_v11, %v119_v10  ;;  %v36_v16 = vld [vmem:[#allocation2 + $0x30] sm:$0xff]  ;;  %v37_v17 = vld [vmem:[#allocation2 + $0x38] sm:$0xff]  ;;  %v642_v18 = vpack.c.bf16 %v122_v13, %v121_v12  ;;  %v123_v19 = vld [vmem:[#allocation2 + $0xa0] sm:$0xff]  ;;  %p740_p8 = scmp.ne.s32.totalorder %s395_s8, %s739_s9  ;;  %p745_p10 = scmp.lt.s32.totalorder %s739_s9, %s739_s9 }
  0x18   :  { %617 = vmatprep.subr.bf16.mxu0 %v768_v0  ;;  %v124_v20 = vld [vmem:[#allocation2 + $0xa8] sm:$0xff]  ;;  %v624_v21 = vpack.c.bf16 %v37_v17, %v36_v16  ;;  %v38_v22 = vld [vmem:[#allocation2 + $0x40] sm:$0xff]  ;;  %v125_v25 = vld [vmem:[#allocation2 + $0xb0] sm:$0xff] }
  0x19   :  { %640 = vmatpush3.bf16.msra.mxu1 %v639_v15  ;;  %v39_v23 = vld [vmem:[#allocation2 + $0x48] sm:$0xff]  ;;  %v645_v24 = vpack.c.bf16 %v124_v20, %v123_v19  ;;  %v126_v26 = vld [vmem:[#allocation2 + $0xb8] sm:$0xff]  ;;  %v40_v28 = vld [vmem:[#allocation2 + $0x50] sm:$0xff]  ;;  %p746_p11 = por %p745_p10, %p744_p9 }
  0x1a   :  { %641 = vmatprep.subr.bf16.mxu1 %v768_v0  ;;  %v627_v27 = vpack.c.bf16 %v39_v23, %v38_v22  ;;  %v41_v29 = vld [vmem:[#allocation2 + $0x58] sm:$0xff]  ;;  %v648_v30 = vpack.c.bf16 %v126_v26, %v125_v25  ;;  %v127_v31 = vld [vmem:[#allocation2 + $0xc0] sm:$0xff]  ;;  %v128_v32 = vld [vmem:[#allocation2 + $0xc8] sm:$0xff] }
  0x1b   :  { %619 = vmatpush3.bf16.msra.mxu0 %v618_v7  ;;  %v630_v33 = vpack.c.bf16 %v41_v29, %v40_v28  ;;  %v42_v34 = vld [vmem:[#allocation2 + $0x60] sm:$0xff]  ;;  %v43_v35 = vld [vmem:[#allocation2 + $0x68] sm:$0xff]  ;;  %v651_v36 = vpack.c.bf16 %v128_v32, %v127_v31  ;;  %v129_v37 = vld [vmem:[#allocation2 + $0xd0] sm:$0xff]  ;;  %p747_p12 = pnand %p746_p11, %p740_p8 }
  0x1c   :  { %620 = vmatprep.subr.bf16.mxu0 %v768_v0  ;;  %v130_v38 = vld [vmem:[#allocation2 + $0xd8] sm:$0xff]  ;;  %v633_v39 = vpack.c.bf16 %v43_v35, %v42_v34  ;;  %v44_v40 = vld [vmem:[#allocation2 + $0x70] sm:$0xff]  ;;  %v131_v43 = vld [vmem:[#allocation2 + $0xe0] sm:$0xff] }
  0x1d   :  { %643 = vmatpush3.bf16.msra.mxu1 %v642_v18  ;;  %v45_v41 = vld [vmem:[#allocation2 + $0x78] sm:$0xff]  ;;  %v654_v42 = vpack.c.bf16 %v130_v38, %v129_v37  ;;  %v132_v44 = vld [vmem:[#allocation2 + $0xe8] sm:$0xff]  ;;  %v29_v47 = vld [vmem:[%s871_s0] sm:$0xff] }
  0x1e   :  { %644 = vmatprep.subr.bf16.mxu1 %v768_v0  ;;  %v636_v45 = vpack.c.bf16 %v45_v41, %v44_v40  ;;  %v657_v46 = vpack.c.bf16 %v132_v44, %v131_v43  ;;  %v133_v48 = vld [vmem:[#allocation2 + $0xf0] sm:$0xff]  ;;  %v134_v49 = vld [vmem:[#allocation2 + $0xf8] sm:$0xff]  ;;  %v209_v51 = vld [vmem:[#allocation2 + $0x100] sm:$0xff] }
  0x1f   :  { %622 = vmatpush3.bf16.msra.mxu0 %v621_v14  ;;  %v660_v50 = vpack.c.bf16 %v134_v49, %v133_v48  ;;  %v210_v52 = vld [vmem:[#allocation2 + $0x108] sm:$0xff]  ;;  %v211_v53 = vld [vmem:[#allocation2 + $0x110] sm:$0xff]  ;;  %v212_v55 = vld [vmem:[#allocation2 + $0x118] sm:$0xff] }
  0x20   :  { %623 = vmatprep.subr.bf16.mxu0 %v768_v0  ;;  %v663_v54 = vpack.c.bf16 %v210_v52, %v209_v51  ;;  %v666_v56 = vpack.c.bf16 %v212_v55, %v211_v53  ;;  %v213_v57 = vld [vmem:[#allocation2 + $0x120] sm:$0xff]  ;;  %v214_v58 = vld [vmem:[#allocation2 + $0x128] sm:$0xff]  ;;  %v215_v60 = vld [vmem:[#allocation2 + $0x130] sm:$0xff] }
  0x21   :  { %646 = vmatpush3.bf16.msra.mxu1 %v645_v24  ;;  %v669_v59 = vpack.c.bf16 %v214_v58, %v213_v57  ;;  %v216_v61 = vld [vmem:[#allocation2 + $0x138] sm:$0xff]  ;;  %v217_v63 = vld [vmem:[#allocation2 + $0x140] sm:$0xff]  ;;  %v218_v2 = vld [vmem:[#allocation2 + $0x148] sm:$0xff] }
  0x22   :  { %647 = vmatprep.subr.bf16.mxu1 %v768_v0  ;;  %v672_v62 = vpack.c.bf16 %v216_v61, %v215_v60  ;;  %v675_v3 = vpack.c.bf16 %v218_v2, %v217_v63  ;;  %v219_v4 = vld [vmem:[#allocation2 + $0x150] sm:$0xff]  ;;  %v220_v5 = vld [vmem:[#allocation2 + $0x158] sm:$0xff]  ;;  %v221_v7 = vld [vmem:[#allocation2 + $0x160] sm:$0xff] }
  0x23   :  { %625 = vmatpush3.bf16.msra.mxu0 %v624_v21  ;;  %v678_v6 = vpack.c.bf16 %v220_v5, %v219_v4  ;;  %v222_v8 = vld [vmem:[#allocation2 + $0x168] sm:$0xff]  ;;  %v46_v10 = vld [vmem:[%s873_s2] sm:$0xff]  ;;  %v223_v15 = vld [vmem:[#allocation2 + $0x170] sm:$0xff] }
  0x24   :  { %626 = vmatprep.subr.bf16.mxu0 %v768_v0  ;;  %v681_v9 = vpack.c.bf16 %v222_v8, %v221_v7  ;;  %v224_v16 = vld [vmem:[#allocation2 + $0x178] sm:$0xff]  ;;  %v299_v18 = vld [vmem:[#allocation2 + $0x180] sm:$0xff]  ;;  %v300_v19 = vld [vmem:[#allocation2 + $0x188] sm:$0xff] }
  0x25   :  { %649 = vmatpush3.bf16.msra.mxu1 %v648_v30  ;;  %v684_v17 = vpack.c.bf16 %v224_v16, %v223_v15  ;;  %v301_v20 = vld [vmem:[#allocation2 + $0x190] sm:$0xff]  ;;  %v687_v21 = vpack.c.bf16 %v300_v19, %v299_v18  ;;  %v302_v22 = vld [vmem:[#allocation2 + $0x198] sm:$0xff]  ;;  %v303_v24 = vld [vmem:[#allocation2 + $0x1a0] sm:$0xff] }
  0x26   :  { %650 = vmatprep.subr.bf16.mxu1 %v768_v0  ;;  %v690_v23 = vpack.c.bf16 %v302_v22, %v301_v20  ;;  %v304_v25 = vld [vmem:[#allocation2 + $0x1a8] sm:$0xff]  ;;  %v307_v29 = vld [vmem:[#allocation2 + $0x1c0] sm:$0xff]  ;;  %v309_v32 = vld [vmem:[#allocation2 + $0x1d0] sm:$0xff] }
  0x27   :  { %628 = vmatpush3.bf16.msra.mxu0 %v627_v27  ;;  %v693_v26 = vpack.c.bf16 %v304_v25, %v303_v24  ;;  %v306_v27 = vld [vmem:[#allocation2 + $0x1b8] sm:$0xff]  ;;  %v308_v30 = vld [vmem:[#allocation2 + $0x1c8] sm:$0xff]  ;;  %v311_v35 = vld [vmem:[#allocation2 + $0x1e0] sm:$0xff] }
  0x28   :  { %629 = vmatprep.subr.bf16.mxu0 %v768_v0  ;;  %v699_v31 = vpack.c.bf16 %v308_v30, %v307_v29  ;;  %v403_v38 = vld [vmem:[%s873_s2 + $0x8] sm:$0xff]  ;;  %v313_v43 = vld [vmem:[#allocation2 + $0x1f0] sm:$0xff]  ;;  %v314_v44 = vld [vmem:[#allocation2 + $0x1f8] sm:$0xff] }
  0x29   :  { %652 = vmatpush3.bf16.msra.mxu1 %v651_v36  ;;  %v312_v36 = vld [vmem:[#allocation2 + $0x1e8] sm:$0xff] }
  0x2a   :  { %653 = vmatprep.subr.bf16.mxu1 %v768_v0  ;;  %v705_v37 = vpack.c.bf16 %v312_v36, %v311_v35 }
  0x2b   :  { %631 = vmatpush3.bf16.msra.mxu0 %v630_v33  ;;  %v310_v33 = vld [vmem:[#allocation2 + $0x1d8] sm:$0xff] }
  0x2c   :  { %632 = vmatprep.subr.bf16.mxu0 %v768_v0  ;;  %v702_v34 = vpack.c.bf16 %v310_v33, %v309_v32 }
  0x2d   :  { %655 = vmatpush3.bf16.msra.mxu1 %v654_v42 }
  0x2e   :  { %656 = vmatprep.subr.bf16.mxu1 %v768_v0 }
  0x2f   :  { %634 = vmatpush3.bf16.msra.mxu0 %v633_v39 }
  0x30   :  { %635 = vmatprep.subr.bf16.mxu0 %v768_v0 }
  0x31   :  { %658 = vmatpush3.bf16.msra.mxu1 %v657_v46  ;;  %v404_v46 = vld [vmem:[%s873_s2 + $0x10] sm:$0xff] }
  0x32   :  { %659 = vmatprep.subr.bf16.mxu1 %v768_v0 }
  0x33   :  { %637 = vmatpush3.bf16.msra.mxu0 %v636_v45  ;;  %v708_v45 = vpack.c.bf16 %v314_v44, %v313_v43 }
  0x34   :  { %662 = vmatprep.subr.bf16.mxu0 %v768_v0 }
  0x35   :  { %661 = vmatpush3.bf16.msra.mxu1 %v660_v50  ;;  %v405_v50 = vld [vmem:[%s873_s2 + $0x18] sm:$0xff] }
  0x36   :  { %507 = vmatmul.mubr.f32.vlgmr.msra.gmra.mrb[0].mxu0 %v29_v47  ;;  %686 = vmatprep.subr.bf16.mxu1 %v768_v0 }
  0x37   :  { %576 = vmatprep.mubr.msk.f32.mxu0 %vm769_vm0, %v770_v1  ;;  %664 = vmatpush3.bf16.msra.mxu0 %v663_v54 }
  0x38   :  { %665 = vmatprep.subr.bf16.mxu0 %v768_v0 }
  0x3b   :  { %667 = vmatpush3.bf16.msra.mxu0 %v666_v56 }
  0x3c   :  { %668 = vmatprep.subr.bf16.mxu0 %v768_v0 }
  0x3f   :  { %670 = vmatpush3.bf16.msra.mxu0 %v669_v59 }
  0x40   :  { %671 = vmatprep.subr.bf16.mxu0 %v768_v0 }
  0x43   :  { %673 = vmatpush3.bf16.msra.mxu0 %v672_v62 }
  0x44   :  { %674 = vmatprep.subr.bf16.mxu0 %v768_v0 }
  0x47   :  { %676 = vmatpush3.bf16.msra.mxu0 %v675_v3 }
  0x48   :  { %677 = vmatprep.subr.bf16.mxu0 %v768_v0 }
  0x4b   :  { %679 = vmatpush3.bf16.msra.mxu0 %v678_v6 }
  0x4c   :  { %680 = vmatprep.subr.bf16.mxu0 %v768_v0 }
  0x4f   :  { %682 = vmatpush3.bf16.msra.mxu0 %v681_v9 }
  0x50   :  { %683 = vmatprep.subr.bf16.mxu0 %v768_v0 }
  0x53   :  { %685 = vmatpush3.bf16.msra.mxu0 %v684_v17 }
 0x109   :  { %v113_v11 = vpop.f32.mrb[0].mxu0 }
 0x10a   :  { %v114_v12 = vadd.f32 %v113_v11, %v46_v10  ;;  %v508_v13 = vpop.f32.mrb[1].mxu0 }
 0x10c   :  { %v117_v14 = vmax.f32 %v114_v12, 0.0 }
 0x10e   :  { %542 = vmatmul.mubr.f32.vlgmr.msra.gmra.mrb[0].mxu1 %v117_v14 }
 0x10f   :  { %611 = vmatprep.mubr.msk.f32.mxu1 %vm769_vm0, %v770_v1  ;;  %688 = vmatpush3.bf16.msra.mxu1 %v687_v21  ;;  %v305_v1 = vld [vmem:[#allocation2 + $0x1b0] sm:$0xff] }
 0x110   :  { %689 = vmatprep.subr.bf16.mxu1 %v768_v0  ;;  %v696_v28 = vpack.c.bf16 %v306_v27, %v305_v1 }
 0x113   :  { %691 = vmatpush3.bf16.msra.mxu1 %v690_v23 }
 0x114   :  { %692 = vmatprep.subr.bf16.mxu1 %v768_v0 }
 0x117   :  { %694 = vmatpush3.bf16.msra.mxu1 %v693_v26 }
 0x118   :  { %695 = vmatprep.subr.bf16.mxu1 %v768_v0 }
 0x11b   :  { %697 = vmatpush3.bf16.msra.mxu1 %v696_v28 }
 0x11c   :  { %698 = vmatprep.subr.bf16.mxu1 %v768_v0 }
 0x11f   :  { %700 = vmatpush3.bf16.msra.mxu1 %v699_v31 }
 0x120   :  { %701 = vmatprep.subr.bf16.mxu1 %v768_v0 }
 0x123   :  { %703 = vmatpush3.bf16.msra.mxu1 %v702_v34 }
 0x124   :  { %704 = vmatprep.subr.bf16.mxu1 %v768_v0 }
 0x127   :  { %706 = vmatpush3.bf16.msra.mxu1 %v705_v37 }
 0x128   :  { %707 = vmatprep.subr.bf16.mxu1 %v768_v0 }
 0x12b   :  { %709 = vmatpush3.bf16.msra.mxu1 %v708_v45 }
 0x1e1   :  { %v203_v39 = vpop.f32.mrb[0].mxu1 }
 0x1e2   :  { %v204_v40 = vadd.f32 %v403_v38, %v203_v39  ;;  %v543_v41 = vpop.f32.mrb[1].mxu1 }
 0x1e4   :  { %v207_v42 = vmax.f32 %v204_v40, 0.0 }
 0x1e6   :  { %577 = vmatmul.mubr.f32.vlgmr.msra.gmra.mrb[2].mxu0 %v207_v42 }
 0x2b9   :  { %v293_v47 = vpop.f32.mrb[2].mxu0 }
 0x2ba   :  { %v294_v48 = vadd.f32 %v404_v46, %v293_v47  ;;  %v578_v0 = vpop.f32.mrb[3].mxu0 }
 0x2bc   :  { %v297_v49 = vmax.f32 %v294_v48, 0.0 }
 0x2be   :  { %612 = vmatmul.mubr.f32.vlgmr.msra.gmra.mrb[2].mxu1 %v297_v49 }
 0x391   :  { %v383_v51 = vpop.f32.mrb[2].mxu1 }
 0x392   :  { %v384_v52 = vadd.f32 %v405_v50, %v383_v51  ;;  %v613_v53 = vpop.f32.mrb[3].mxu1 }
 0x394   :  { %387 = vst [vmem:[#allocation5] sm:$0xff] %v384_v52 }
 0x395   :  { %750 = shalt.err (!%p747_p12)
}
 0x396   :  { %s751_s12 = scalar_lea.hbm %s874_s3, 128 }
 0x397   :  { %p752_p13 = scmp.ne.s32.totalorder %s874_s3, %s751_s12  ;;  %p755_p0 = scmp.lt.u32.totalorder %s751_s12, %s874_s3 }
 0x399   :  { %p757_p1 = pnand %p755_p0, %p752_p13 }
 0x39b   :  { %760 = shalt.err (!%p757_p1)
}
 0x39c   :  { %397 = dma.vmem_to_hbm [thread:$0]  %s395_s8, 128, %s874_s3, [#allocation4]  }
 0x39d   :  { %763 = dma.done.wait [#allocation4], 128  }
 0x39e   :  { %764 = vsyncadd [#allocation4], 4294967168 }
 0x39f   :  { %401 = vsyncpa [#allocation3], 1 }
 0x3a0   :  { %402 = vsyncpa [#allocation4], 1 }

</bundles_post_ra>
